<compile_context>
chip_gen: v6e
topology: v6e:2x2x1
jax: 0.10.0
libtpu: 0.0.40
codegen_flags: <defaults>
</compile_context>

<pallas_src>
import functools

import jax
import jax.numpy as jnp
from jax.experimental import pallas as pl
from jax.experimental.pallas import tpu as pltpu

LATENT_SIZE = 64
HIDDEN_SIZE = 256
IMAGE_SIZE = 784
IMAGE_SIZE_PADDED = 896          # 7 * 128 -> lane-dense output stores
MAX_TILE_B = 256                 # batch tile (rows per grid step)


def _round_up(x, m):
    return ((x + m - 1) // m) * m


def generator_kernel(x_ref, w1_ref, b1_ref, w2_ref, b2_ref, o_ref):
    # fc1 (bf16 operands on the MXU, f32 accumulation) + bias + relu in f32.
    h = jnp.dot(x_ref[...], w1_ref[...], preferred_element_type=jnp.float32)
    h = jnp.maximum(h + b1_ref[...], 0.0)
    # fc2: cast hidden to bf16 for the MXU, accumulate f32, bias + tanh in f32.
    y = jnp.dot(h.astype(jnp.bfloat16), w2_ref[...],
                preferred_element_type=jnp.float32)
    y = y + b2_ref[...]
    o_ref[...] = jnp.tanh(y).astype(o_ref.dtype)


@jax.jit
def generator_forward(x, w1_t, b1, w2_t, b2):
    B = x.shape[0]

    # Batch tiling: pad B to a multiple of the tile so block shapes stay
    # (8,128)-friendly; padded rows are zeros and sliced off at the end.
    tile_b = min(MAX_TILE_B, _round_up(B, 8))
    b_pad = _round_up(B, tile_b)

    # bf16 matmul operands; f32 biases.
    xp = jnp.pad(x, ((0, b_pad - B), (0, 0))).astype(jnp.bfloat16)
    w1b = w1_t.astype(jnp.bfloat16)
    # Pad output features 784 -> 896 with zero weights / zero bias
    # (tanh(0) = 0 in the padded columns; they are sliced off below).
    w2b = jnp.pad(w2_t, ((0, 0), (0, IMAGE_SIZE_PADDED - IMAGE_SIZE))
                  ).astype(jnp.bfloat16)
    b2p = jnp.pad(b2, ((0, 0), (0, IMAGE_SIZE_PADDED - IMAGE_SIZE)))

    grid = (b_pad // tile_b,)

    out_padded = pl.pallas_call(
        generator_kernel,
        out_shape=jax.ShapeDtypeStruct((b_pad, IMAGE_SIZE_PADDED), jnp.float32),
        grid_spec=pltpu.PrefetchScalarGridSpec(
            num_scalar_prefetch=0,
            grid=grid,
            in_specs=[
                pl.BlockSpec((tile_b, LATENT_SIZE), lambda i: (i, 0)),
                pl.BlockSpec((LATENT_SIZE, HIDDEN_SIZE), lambda i: (0, 0)),
                pl.BlockSpec((1, HIDDEN_SIZE), lambda i: (0, 0)),
                pl.BlockSpec((HIDDEN_SIZE, IMAGE_SIZE_PADDED), lambda i: (0, 0)),
                pl.BlockSpec((1, IMAGE_SIZE_PADDED), lambda i: (0, 0)),
            ],
            out_specs=pl.BlockSpec((tile_b, IMAGE_SIZE_PADDED),
                                   lambda i: (i, 0)),
        ),
        compiler_params=pltpu.CompilerParams(
            dimension_semantics=("parallel",),
        ),
    )(xp, w1b, b1, w2b, b2p)

    # Drop batch padding and the padded output columns.
    return out_padded[:B, :IMAGE_SIZE]


def init_params(key):
    # Deterministic init mimicking nn.Linear default (uniform +- 1/sqrt(fan_in)).
    k1, k2, k3, k4 = jax.random.split(key, 4)
    bound1 = 1.0 / jnp.sqrt(LATENT_SIZE)
    bound2 = 1.0 / jnp.sqrt(HIDDEN_SIZE)
    # Stored already transposed: (in, out)
    w1_t = jax.random.uniform(k1, (LATENT_SIZE, HIDDEN_SIZE), jnp.float32,
                              -bound1, bound1)
    b1 = jax.random.uniform(k2, (1, HIDDEN_SIZE), jnp.float32, -bound1, bound1)
    w2_t = jax.random.uniform(k3, (HIDDEN_SIZE, IMAGE_SIZE), jnp.float32,
                              -bound2, bound2)
    b2 = jax.random.uniform(k4, (1, IMAGE_SIZE), jnp.float32, -bound2, bound2)
    return w1_t, b1, w2_t, b2


if __name__ == "__main__":
    key = jax.random.PRNGKey(0)
    k_params, k_x = jax.random.split(key)
    w1_t, b1, w2_t, b2 = init_params(k_params)

    batch = 8
    x = jax.random.normal(k_x, (batch, LATENT_SIZE), jnp.float32)

    out = generator_forward(x, w1_t, b1, w2_t, b2)
    out = jax.block_until_ready(out)

    # Reference in plain f32 JAX (same math as the PyTorch module).
    ref = jnp.tanh(jnp.maximum(x @ w1_t + b1, 0.0) @ w2_t + b2)
    assert out.shape == (batch, IMAGE_SIZE)
    # bf16 matmul operands -> loosen tolerance (tanh output is in [-1, 1]).
    assert jnp.allclose(out, ref, atol=2e-2, rtol=2e-2), (
        float(jnp.max(jnp.abs(out - ref))))

    print("KERNEL_OK")
</pallas_src>

<mosaic_0001>
module attributes {stable_mosaic.version = 11 : i64} {
  func.func @generator_kernel(%arg0: i32, %arg1: memref<8x64xbf16, #tpu.memory_space<vmem>>, %arg2: memref<64x256xbf16, #tpu.memory_space<vmem>>, %arg3: memref<1x256xf32, #tpu.memory_space<vmem>>, %arg4: memref<256x896xbf16, #tpu.memory_space<vmem>>, %arg5: memref<1x896xf32, #tpu.memory_space<vmem>>, %arg6: memref<8x896xf32, #tpu.memory_space<vmem>>) attributes {dimension_semantics = [#tpu.dimension_semantics<parallel>], iteration_bounds = array<i64: 1>, scalar_prefetch = 0 : i64, scratch_operands = 0 : i64, tpu.core_type = #tpu.core_type<tc>, window_params = [{transform_indices = @transform_0, window_bounds = array<i64: 8, 64>}, {pipeline_mode = #tpu.pipeline_mode<synchronous>, transform_indices = @transform_1, window_bounds = array<i64: 64, 256>}, {pipeline_mode = #tpu.pipeline_mode<synchronous>, transform_indices = @transform_2, window_bounds = array<i64: 1, 256>}, {pipeline_mode = #tpu.pipeline_mode<synchronous>, transform_indices = @transform_3, window_bounds = array<i64: 256, 896>}, {pipeline_mode = #tpu.pipeline_mode<synchronous>, transform_indices = @transform_4, window_bounds = array<i64: 1, 896>}, {transform_indices = @transform_5, window_bounds = array<i64: 8, 896>}]} {
    %c0 = arith.constant 0 : index
    %c0_0 = arith.constant 0 : index
    %0 = vector.load %arg1[%c0, %c0_0] : memref<8x64xbf16, #tpu.memory_space<vmem>>, vector<8x64xbf16>
    %c0_1 = arith.constant 0 : index
    %c0_2 = arith.constant 0 : index
    %1 = vector.load %arg2[%c0_1, %c0_2] : memref<64x256xbf16, #tpu.memory_space<vmem>>, vector<64x256xbf16>
    %cst = arith.constant dense<0.000000e+00> : vector<8x256xf32>
    %2 = tpu.matmul %0, %1, %cst {dimension_numbers = #tpu.dot_dimension_numbers<[1], [0], [0], [1], [0, 0, 1, 1], [], []>} : vector<8x64xbf16>, vector<64x256xbf16>, vector<8x256xf32> -> vector<8x256xf32>
    %c0_3 = arith.constant 0 : index
    %c0_4 = arith.constant 0 : index
    %3 = vector.load %arg3[%c0_3, %c0_4] : memref<1x256xf32, #tpu.memory_space<vmem>>, vector<1x256xf32>
    %4 = vector.broadcast %3 : vector<1x256xf32> to vector<8x256xf32>
    %5 = arith.addf %2, %4 : vector<8x256xf32>
    %cst_5 = arith.constant 0.000000e+00 : f32
    %6 = vector.broadcast %cst_5 : f32 to vector<8x256xf32>
    %7 = arith.maximumf %5, %6 : vector<8x256xf32>
    %8 = arith.truncf %7 : vector<8x256xf32> to vector<8x256xbf16>
    %c0_6 = arith.constant 0 : index
    %c0_7 = arith.constant 0 : index
    %9 = vector.load %arg4[%c0_6, %c0_7] : memref<256x896xbf16, #tpu.memory_space<vmem>>, vector<256x896xbf16>
    %cst_8 = arith.constant dense<0.000000e+00> : vector<8x896xf32>
    %10 = tpu.matmul %8, %9, %cst_8 {dimension_numbers = #tpu.dot_dimension_numbers<[1], [0], [0], [1], [0, 0, 1, 1], [], []>} : vector<8x256xbf16>, vector<256x896xbf16>, vector<8x896xf32> -> vector<8x896xf32>
    %c0_9 = arith.constant 0 : index
    %c0_10 = arith.constant 0 : index
    %11 = vector.load %arg5[%c0_9, %c0_10] : memref<1x896xf32, #tpu.memory_space<vmem>>, vector<1x896xf32>
    %12 = vector.broadcast %11 : vector<1x896xf32> to vector<8x896xf32>
    %13 = arith.addf %10, %12 : vector<8x896xf32>
    %14 = math.tanh %13 : vector<8x896xf32>
    %c0_11 = arith.constant 0 : index
    %c0_12 = arith.constant 0 : index
    %15 = vector.load %arg6[%c0_11, %c0_12] : memref<8x896xf32, #tpu.memory_space<vmem>>, vector<8x896xf32>
    tpu.vector_store %arg6[%c0_11, %c0_12], %14 {strides = array<i32>} : memref<8x896xf32, #tpu.memory_space<vmem>>, vector<8x896xf32>,
    return
  }
  func.func @transform_0(%arg0: i32) -> (i32, i32) {
    %c0_i32 = arith.constant 0 : i32
    %c0_i32_0 = arith.constant 0 : i32
    return %arg0, %c0_i32 : i32, i32
  }
  func.func @transform_1(%arg0: i32) -> (i32, i32) {
    %c0_i32 = arith.constant 0 : i32
    %c0_i32_0 = arith.constant 0 : i32
    %c0_i32_1 = arith.constant 0 : i32
    return %c0_i32, %c0_i32_0 : i32, i32
  }
  func.func @transform_2(%arg0: i32) -> (i32, i32) {
    %c0_i32 = arith.constant 0 : i32
    %c0_i32_0 = arith.constant 0 : i32
    %c0_i32_1 = arith.constant 0 : i32
    return %c0_i32, %c0_i32_0 : i32, i32
  }
  func.func @transform_3(%arg0: i32) -> (i32, i32) {
    %c0_i32 = arith.constant 0 : i32
    %c0_i32_0 = arith.constant 0 : i32
    %c0_i32_1 = arith.constant 0 : i32
    return %c0_i32, %c0_i32_0 : i32, i32
  }
  func.func @transform_4(%arg0: i32) -> (i32, i32) {
    %c0_i32 = arith.constant 0 : i32
    %c0_i32_0 = arith.constant 0 : i32
    %c0_i32_1 = arith.constant 0 : i32
    return %c0_i32, %c0_i32_0 : i32, i32
  }
  func.func @transform_5(%arg0: i32) -> (i32, i32) {
    %c0_i32 = arith.constant 0 : i32
    %c0_i32_0 = arith.constant 0 : i32
    return %arg0, %c0_i32 : i32, i32
  }
}

</mosaic_0001>

<bundles_post_ra>
// kernel: generator_forward.1
= control target key start
LH: loop header
LB: loop body
LE: loop exit
PB: predicated region body
PF: predicated region fallthrough
CT: control target
= control target key end

     0   :  { %v1417_v2 = vmov 0   ;;  %vm83_vm0 = vcmask 523264   ;;  %s1844_s0 = inlined_call_operand.vmem [shape: bf16[8,64], index: 0, kind: input, shape index: {}]   ;;  %s1845_s1 = inlined_call_operand.vmem [shape: bf16[64,256], index: 1, kind: input, shape index: {}]   ;;  %s1846_s2 = inlined_call_operand.vmem [shape: f32[1,256], index: 2, kind: input, shape index: {}]   ;;  %s1847_s3 = inlined_call_operand.vmem [shape: bf16[256,896], index: 3, kind: input, shape index: {}]   ;;  %s1848_s4 = inlined_call_operand.vmem [shape: f32[1,896], index: 4, kind: input, shape index: {}]   ;;  %s1849_s5 = inlined_call_operand.hbm [shape: f32[8,896], index: 5, kind: output, shape index: {}]  }
   0x1   :  { %v1209_v0 = vld [vmem:[%s1845_s1 + $0x34] ss:$8 sps:$4 sm:$0xff]   ;;  %v1211_v1 = vld [vmem:[%s1845_s1 + $0x30] ss:$8 sps:$4 sm:$0xff]   ;;  %119 = vmatprep.mubr.bf16.mxu0 %v1417_v2  ;;  %v1212_v3 = vld [vmem:[%s1845_s1 + $0x24] ss:$8 sps:$4 sm:$0xff]  }
   0x2   :  { %95 = vmatprep.subr.bf16.mxu0 %v1209_v0  ;;  %v1214_v4 = vld [vmem:[%s1845_s1 + $0x20] ss:$8 sps:$4 sm:$0xff]   ;;  %v1215_v5 = vld [vmem:[%s1845_s1 + $0x14] ss:$8 sps:$4 sm:$0xff]   ;;  %v1217_v7 = vld [vmem:[%s1845_s1 + $0x10] ss:$8 sps:$4 sm:$0xff]  }
   0x3   :  { %96 = vmatpush1.bf16.msra.mxu0 %v1211_v1  ;;  %v1221_v6 = vld [vmem:[%s1847_s3 + $0x18c] ss:$28 sps:$4 sm:$0xff]   ;;  %v1227_v10 = vld [vmem:[%s1847_s3 + $0x154] ss:$28 sps:$4 sm:$0xff]   ;;  %v1233_v13 = vld [vmem:[%s1847_s3 + $0x11c] ss:$28 sps:$4 sm:$0xff]  }
   0x4   :  { %97 = vmatprep.subr.bf16.mxu0 %v1212_v3  ;;  %v1218_v8 = vld [vmem:[%s1845_s1 + $0x4] ss:$8 sps:$4 sm:$0xff]   ;;  %873 = vmatprep.subr.bf16.mxu1 %v1221_v6  ;;  %v1220_v11 = vld [vmem:[%s1845_s1] ss:$8 sps:$4 sm:$0xff]   ;;  %v1225_v14 = vld [vmem:[%s1847_s3 + $0x194] ss:$28 sps:$4 sm:$0xff]  }
   0x5   :  { %v1226_v9 = vld [vmem:[%s1847_s3 + $0x188] ss:$28 sps:$4 sm:$0xff]   ;;  %v1232_v12 = vld [vmem:[%s1847_s3 + $0x150] ss:$28 sps:$4 sm:$0xff]   ;;  %v22_v15 = vld [vmem:[%s1844_s0] sm:$0xf] }
   0x6   :  { %874 = vmatpush1.bf16.msra.mxu1 %v1226_v9  ;;  %v1238_v16 = vld [vmem:[%s1847_s3 + $0x118] ss:$28 sps:$4 sm:$0xff]   ;;  %v1223_v17 = vld [vmem:[%s1847_s3 + $0x190] ss:$28 sps:$4 sm:$0xff]   ;;  %v1239_v18 = vld [vmem:[%s1847_s3 + $0xe4] ss:$28 sps:$4 sm:$0xff]  }
   0x7   :  { %98 = vmatpush1.bf16.msra.mxu0 %v1214_v4  ;;  %875 = vmatprep.subr.bf16.mxu1 %v1227_v10  ;;  %v1231_v19 = vld [vmem:[%s1847_s3 + $0x15c] ss:$28 sps:$4 sm:$0xff]   ;;  %v1245_v22 = vld [vmem:[%s1847_s3 + $0xac] ss:$28 sps:$4 sm:$0xff]   ;;  %v1237_v23 = vld [vmem:[%s1847_s3 + $0x124] ss:$28 sps:$4 sm:$0xff]  }
   0x8   :  { %99 = vmatprep.subr.bf16.mxu0 %v1215_v5  ;;  %v1229_v20 = vld [vmem:[%s1847_s3 + $0x158] ss:$28 sps:$4 sm:$0xff]   ;;  %v1244_v21 = vld [vmem:[%s1847_s3 + $0xe0] ss:$28 sps:$4 sm:$0xff]   ;;  %v1250_v24 = vld [vmem:[%s1847_s3 + $0xa8] ss:$28 sps:$4 sm:$0xff]  }
   0x9   :  { %v1235_v25 = vld [vmem:[%s1847_s3 + $0x120] ss:$28 sps:$4 sm:$0xff]   ;;  %v1251_v26 = vld [vmem:[%s1847_s3 + $0x74] ss:$28 sps:$4 sm:$0xff]   ;;  %v1243_v27 = vld [vmem:[%s1847_s3 + $0xec] ss:$28 sps:$4 sm:$0xff]  }
   0xa   :  { %876 = vmatpush1.bf16.msra.mxu1 %v1232_v12  ;;  %v1241_v28 = vld [vmem:[%s1847_s3 + $0xe8] ss:$28 sps:$4 sm:$0xff]   ;;  %v1256_v29 = vld [vmem:[%s1847_s3 + $0x70] ss:$28 sps:$4 sm:$0xff]   ;;  %v1257_v30 = vld [vmem:[%s1847_s3 + $0x3c] ss:$28 sps:$4 sm:$0xff]  }
   0xb   :  { %100 = vmatpush1.bf16.msra.mxu0 %v1217_v7  ;;  %877 = vmatprep.subr.bf16.mxu1 %v1233_v13  ;;  %v1249_v31 = vld [vmem:[%s1847_s3 + $0xb4] ss:$28 sps:$4 sm:$0xff]   ;;  %v1263_v34 = vld [vmem:[%s1847_s3 + $0x4] ss:$28 sps:$4 sm:$0xff]   ;;  %v1255_v35 = vld [vmem:[%s1847_s3 + $0x7c] ss:$28 sps:$4 sm:$0xff]  }
   0xc   :  { %101 = vmatprep.subr.bf16.mxu0 %v1218_v8  ;;  %v1262_v32 = vld [vmem:[%s1847_s3 + $0x38] ss:$28 sps:$4 sm:$0xff]   ;;  %v1247_v33 = vld [vmem:[%s1847_s3 + $0xb0] ss:$28 sps:$4 sm:$0xff]   ;;  %v1268_v37 = vld [vmem:[%s1847_s3] ss:$28 sps:$4 sm:$0xff]  }
   0xd   :  { %v1253_v36 = vld [vmem:[%s1847_s3 + $0x78] ss:$28 sps:$4 sm:$0xff]   ;;  %v1269_v38 = vld [vmem:[%s1847_s3 + $0x34c] ss:$28 sps:$4 sm:$0xff]   ;;  %v1261_v39 = vld [vmem:[%s1847_s3 + $0x44] ss:$28 sps:$4 sm:$0xff]  }
   0xe   :  { %878 = vmatpush1.bf16.msra.mxu1 %v1238_v16  ;;  %v1274_v40 = vld [vmem:[%s1847_s3 + $0x348] ss:$28 sps:$4 sm:$0xff]   ;;  %v1259_v41 = vld [vmem:[%s1847_s3 + $0x40] ss:$28 sps:$4 sm:$0xff]   ;;  %v1275_v42 = vld [vmem:[%s1847_s3 + $0x314] ss:$28 sps:$4 sm:$0xff]  }
   0xf   :  { %102 = vmatpush1.bf16.msra.mxu0 %v1220_v11  ;;  %879 = vmatprep.subr.bf16.mxu1 %v1239_v18  ;;  %v1267_v43 = vld [vmem:[%s1847_s3 + $0xc] ss:$28 sps:$4 sm:$0xff]   ;;  %v1273_v45 = vld [vmem:[%s1847_s3 + $0x354] ss:$28 sps:$4 sm:$0xff]   ;;  %v1281_v47 = vld [vmem:[%s1847_s3 + $0x2dc] ss:$28 sps:$4 sm:$0xff]  }
  0x10   :  { %914 = vmatprep.subr.bf16.mxu0 %v1225_v14  ;;  %v1265_v44 = vld [vmem:[%s1847_s3 + $0x8] ss:$28 sps:$4 sm:$0xff]   ;;  %v1280_v46 = vld [vmem:[%s1847_s3 + $0x310] ss:$28 sps:$4 sm:$0xff]   ;;  %v1286_v48 = vld [vmem:[%s1847_s3 + $0x2d8] ss:$28 sps:$4 sm:$0xff]  }
  0x11   :  { %v1271_v49 = vld [vmem:[%s1847_s3 + $0x350] ss:$28 sps:$4 sm:$0xff]   ;;  %v1287_v50 = vld [vmem:[%s1847_s3 + $0x2a4] ss:$28 sps:$4 sm:$0xff]   ;;  %v1279_v51 = vld [vmem:[%s1847_s3 + $0x31c] ss:$28 sps:$4 sm:$0xff]  }
  0x12   :  { %1072 = vmatmul.mubr.msk.bf16.vlgmr.msra.gmra.mxu0 %vm83_vm0, %v22_v15  ;;  %880 = vmatpush1.bf16.msra.mxu1 %v1244_v21  ;;  %v1292_v52 = vld [vmem:[%s1847_s3 + $0x2a0] ss:$28 sps:$4 sm:$0xff]   ;;  %v1277_v53 = vld [vmem:[%s1847_s3 + $0x318] ss:$28 sps:$4 sm:$0xff]   ;;  %v1293_v54 = vld [vmem:[%s1847_s3 + $0x26c] ss:$28 sps:$4 sm:$0xff]  }
  0x13   :  { %915 = vmatpush1.bf16.msra.mxu0 %v1223_v17  ;;  %881 = vmatprep.subr.bf16.mxu1 %v1245_v22  ;;  %v1285_v55 = vld [vmem:[%s1847_s3 + $0x2e4] ss:$28 sps:$4 sm:$0xff]   ;;  %v1299_v58 = vld [vmem:[%s1847_s3 + $0x234] ss:$28 sps:$4 sm:$0xff]   ;;  %v1291_v59 = vld [vmem:[%s1847_s3 + $0x2ac] ss:$28 sps:$4 sm:$0xff]  }
  0x14   :  { %916 = vmatprep.subr.bf16.mxu0 %v1231_v19  ;;  %v1298_v56 = vld [vmem:[%s1847_s3 + $0x268] ss:$28 sps:$4 sm:$0xff]   ;;  %v1283_v57 = vld [vmem:[%s1847_s3 + $0x2e0] ss:$28 sps:$4 sm:$0xff]   ;;  %v1304_v60 = vld [vmem:[%s1847_s3 + $0x230] ss:$28 sps:$4 sm:$0xff]  }
  0x15   :  { %v1289_v61 = vld [vmem:[%s1847_s3 + $0x2a8] ss:$28 sps:$4 sm:$0xff]   ;;  %v1297_v62 = vld [vmem:[%s1847_s3 + $0x274] ss:$28 sps:$4 sm:$0xff]   ;;  %v1303_v0 = vld [vmem:[%s1847_s3 + $0x23c] ss:$28 sps:$4 sm:$0xff]  }
  0x16   :  { %882 = vmatpush1.bf16.msra.mxu1 %v1250_v24  ;;  %v1295_v63 = vld [vmem:[%s1847_s3 + $0x270] ss:$28 sps:$4 sm:$0xff]   ;;  %v1301_v1 = vld [vmem:[%s1847_s3 + $0x238] ss:$28 sps:$4 sm:$0xff]  }
  0x17   :  { %917 = vmatpush1.bf16.msra.mxu0 %v1229_v20  ;;  %883 = vmatprep.subr.bf16.mxu1 %v1251_v26 }
  0x18   :  { %918 = vmatprep.subr.bf16.mxu0 %v1237_v23 }
  0x1a   :  { %884 = vmatpush1.bf16.msra.mxu1 %v1256_v29 }
  0x1b   :  { %919 = vmatpush1.bf16.msra.mxu0 %v1235_v25  ;;  %885 = vmatprep.subr.bf16.mxu1 %v1257_v30 }
  0x1c   :  { %920 = vmatprep.subr.bf16.mxu0 %v1243_v27 }
  0x1e   :  { %886 = vmatpush1.bf16.msra.mxu1 %v1262_v32 }
  0x1f   :  { %921 = vmatpush1.bf16.msra.mxu0 %v1241_v28  ;;  %887 = vmatprep.subr.bf16.mxu1 %v1263_v34 }
  0x20   :  { %922 = vmatprep.subr.bf16.mxu0 %v1249_v31 }
  0x22   :  { %888 = vmatpush1.bf16.msra.mxu1 %v1268_v37 }
  0x23   :  { %923 = vmatpush1.bf16.msra.mxu0 %v1247_v33  ;;  %889 = vmatprep.subr.bf16.mxu1 %v1269_v38 }
  0x24   :  { %924 = vmatprep.subr.bf16.mxu0 %v1255_v35 }
  0x26   :  { %890 = vmatpush2.bf16.msra.mxu1 %v1274_v40 }
  0x27   :  { %925 = vmatpush1.bf16.msra.mxu0 %v1253_v36  ;;  %891 = vmatprep.subr.bf16.mxu1 %v1275_v42 }
  0x28   :  { %926 = vmatprep.subr.bf16.mxu0 %v1261_v39 }
  0x2a   :  { %892 = vmatpush2.bf16.msra.mxu1 %v1280_v46 }
  0x2b   :  { %927 = vmatpush1.bf16.msra.mxu0 %v1259_v41  ;;  %893 = vmatprep.subr.bf16.mxu1 %v1281_v47 }
  0x2c   :  { %928 = vmatprep.subr.bf16.mxu0 %v1267_v43 }
  0x2e   :  { %894 = vmatpush2.bf16.msra.mxu1 %v1286_v48 }
  0x2f   :  { %929 = vmatpush1.bf16.msra.mxu0 %v1265_v44  ;;  %895 = vmatprep.subr.bf16.mxu1 %v1287_v50 }
  0x30   :  { %930 = vmatprep.subr.bf16.mxu0 %v1273_v45 }
  0x32   :  { %896 = vmatpush2.bf16.msra.mxu1 %v1292_v52 }
  0x33   :  { %931 = vmatpush2.bf16.msra.mxu0 %v1271_v49  ;;  %897 = vmatprep.subr.bf16.mxu1 %v1293_v54 }
  0x34   :  { %932 = vmatprep.subr.bf16.mxu0 %v1279_v51 }
  0x36   :  { %898 = vmatpush2.bf16.msra.mxu1 %v1298_v56 }
  0x37   :  { %933 = vmatpush2.bf16.msra.mxu0 %v1277_v53  ;;  %899 = vmatprep.subr.bf16.mxu1 %v1299_v58 }
  0x38   :  { %934 = vmatprep.subr.bf16.mxu0 %v1285_v55 }
  0x3a   :  { %900 = vmatpush2.bf16.msra.mxu1 %v1304_v60 }
  0x3b   :  { %935 = vmatpush2.bf16.msra.mxu0 %v1283_v57 }
  0x3c   :  { %936 = vmatprep.subr.bf16.mxu0 %v1291_v59 }
  0x3f   :  { %937 = vmatpush2.bf16.msra.mxu0 %v1289_v61 }
  0x40   :  { %938 = vmatprep.subr.bf16.mxu0 %v1297_v62 }
  0x43   :  { %939 = vmatpush2.bf16.msra.mxu0 %v1295_v63 }
  0x44   :  { %10 = vsyncpa [#allocation3], 0  ;;  %940 = vmatprep.subr.bf16.mxu0 %v1303_v0  ;;  %v1305_v2 = vld [vmem:[%s1847_s3 + $0x1fc] ss:$28 sps:$4 sm:$0xff]   ;;  %v1309_v3 = vld [vmem:[%s1847_s3 + $0x204] ss:$28 sps:$4 sm:$0xff]   ;;  %v33_v12 = vlaneseq }
  0x45   :  { %v1307_v4 = vld [vmem:[%s1847_s3 + $0x200] ss:$28 sps:$4 sm:$0xff]   ;;  %v1310_v5 = vld [vmem:[%s1847_s3 + $0x1f8] ss:$28 sps:$4 sm:$0xff]   ;;  %901 = vmatprep.subr.bf16.mxu1 %v1305_v2  ;;  %v1315_v7 = vld [vmem:[%s1847_s3 + $0x1cc] ss:$28 sps:$4 sm:$0xff]  }
  0x46   :  { %902 = vmatpush2.bf16.msra.mxu1 %v1310_v5  ;;  %v1311_v6 = vld [vmem:[%s1847_s3 + $0x1c4] ss:$28 sps:$4 sm:$0xff]   ;;  %v1319_v10 = vld [vmem:[%s1847_s3 + $0x19c] ss:$28 sps:$4 sm:$0xff]   ;;  %v1674_v13 = vshrl.u32 %v33_v12, 7 }
  0x47   :  { %941 = vmatpush2.bf16.msra.mxu0 %v1301_v1  ;;  %v1313_v8 = vld [vmem:[%s1847_s3 + $0x1c8] ss:$28 sps:$4 sm:$0xff]   ;;  %v1316_v9 = vld [vmem:[%s1847_s3 + $0x1c0] ss:$28 sps:$4 sm:$0xff]   ;;  %903 = vmatprep.subr.bf16.mxu1 %v1311_v6  ;;  %v1317_v28 = vld [vmem:[%s1847_s3 + $0x198] ss:$28 sps:$4 sm:$0xff]  }
  0x48   :  { %942 = vmatprep.subr.bf16.mxu0 %v1309_v3  ;;  %v1320_v11 = vld [vmem:[%s1847_s3 + $0x360] ss:$28 sps:$4 sm:$0xff]   ;;  %v35_v14 = vsub.s32 0, %v1674_v13  ;;  %v39_v16 = vsub.s32 1, %v1674_v13  ;;  %v1325_v32 = vld [vmem:[%s1847_s3 + $0x328] ss:$28 sps:$4 sm:$0xff]  }
  0x49   :  { %v31_v15 = vld [vmem:[%s1846_s2] sm:$0x3]  ;;  %v1326_v34 = vld [vmem:[%s1847_s3 + $0x168] ss:$28 sps:$4 sm:$0xff]   ;;  %v1330_v36 = vld [vmem:[%s1847_s3 + $0x2f0] ss:$28 sps:$4 sm:$0xff]  }
  0x4a   :  { %904 = vmatpush2.bf16.msra.mxu1 %v1316_v9  ;;  %v36_v17 = vrot.slane %v31_v15, %v35_v14  ;;  %v40_v18 = vrot.slane %v31_v15, %v39_v16  ;;  %v1321_v29 = vld [vmem:[%s1847_s3 + $0x1a0] ss:$28 sps:$4 sm:$0xff]   ;;  %v1329_v35 = vld [vmem:[%s1847_s3 + $0x12c] ss:$28 sps:$4 sm:$0xff]   ;;  %v1334_v39 = vld [vmem:[%s1847_s3 + $0xf4] ss:$28 sps:$4 sm:$0xff]  }
  0x4b   :  { %943 = vmatpush2.bf16.msra.mxu0 %v1307_v4  ;;  %955 = vmatprep.subr.bf16.mxu1 %v1319_v10  ;;  %v1324_v31 = vld [vmem:[%s1847_s3 + $0x164] ss:$28 sps:$4 sm:$0xff]   ;;  %v1331_v38 = vld [vmem:[%s1847_s3 + $0x130] ss:$28 sps:$4 sm:$0xff]   ;;  %v1335_v40 = vld [vmem:[%s1847_s3 + $0x2b8] ss:$28 sps:$4 sm:$0xff]  }
  0x4c   :  { %944 = vmatprep.subr.bf16.mxu0 %v1315_v7  ;;  %v1322_v33 = vld [vmem:[%s1847_s3 + $0x160] ss:$28 sps:$4 sm:$0xff]   ;;  %v1327_v37 = vld [vmem:[%s1847_s3 + $0x128] ss:$28 sps:$4 sm:$0xff]   ;;  %v1332_v41 = vld [vmem:[%s1847_s3 + $0xf0] ss:$28 sps:$4 sm:$0xff]  }
  0x4d   :  { %v1336_v42 = vld [vmem:[%s1847_s3 + $0xf8] ss:$28 sps:$4 sm:$0xff]   ;;  %v1340_v44 = vld [vmem:[%s1847_s3 + $0x280] ss:$28 sps:$4 sm:$0xff]   ;;  %v1345_v48 = vld [vmem:[%s1847_s3 + $0x248] ss:$28 sps:$4 sm:$0xff]  }
  0x4e   :  { %v1339_v43 = vld [vmem:[%s1847_s3 + $0xbc] ss:$28 sps:$4 sm:$0xff]   ;;  %v1344_v47 = vld [vmem:[%s1847_s3 + $0x84] ss:$28 sps:$4 sm:$0xff]   ;;  %v1349_v51 = vld [vmem:[%s1847_s3 + $0x4c] ss:$28 sps:$4 sm:$0xff]  }
  0x4f   :  { %945 = vmatpush2.bf16.msra.mxu0 %v1313_v8  ;;  %v1337_v45 = vld [vmem:[%s1847_s3 + $0xb8] ss:$28 sps:$4 sm:$0xff]   ;;  %v1341_v46 = vld [vmem:[%s1847_s3 + $0xc0] ss:$28 sps:$4 sm:$0xff]   ;;  %v1346_v50 = vld [vmem:[%s1847_s3 + $0x88] ss:$28 sps:$4 sm:$0xff]  }
  0x50   :  { %1185 = vmatprep.subr.bf16.mxu0 %v1320_v11  ;;  %v1342_v49 = vld [vmem:[%s1847_s3 + $0x80] ss:$28 sps:$4 sm:$0xff]   ;;  %v1350_v52 = vld [vmem:[%s1847_s3 + $0x210] ss:$28 sps:$4 sm:$0xff]   ;;  %v1347_v53 = vld [vmem:[%s1847_s3 + $0x48] ss:$28 sps:$4 sm:$0xff]  }
  0x51   :  { %v1351_v54 = vld [vmem:[%s1847_s3 + $0x50] ss:$28 sps:$4 sm:$0xff]   ;;  %v1355_v56 = vld [vmem:[%s1847_s3 + $0x1d8] ss:$28 sps:$4 sm:$0xff]   ;;  %v1362_v61 = vld [vmem:[%s1847_s3 + $0x324] ss:$28 sps:$4 sm:$0xff]  }
  0x52   :  { %v1354_v55 = vld [vmem:[%s1847_s3 + $0x14] ss:$28 sps:$4 sm:$0xff]   ;;  %v1359_v59 = vld [vmem:[%s1847_s3 + $0x35c] ss:$28 sps:$4 sm:$0xff]   ;;  %v1365_v63 = vld [vmem:[%s1847_s3 + $0x2ec] ss:$28 sps:$4 sm:$0xff]  }
  0x53   :  { %v1352_v57 = vld [vmem:[%s1847_s3 + $0x10] ss:$28 sps:$4 sm:$0xff]   ;;  %v1356_v58 = vld [vmem:[%s1847_s3 + $0x18] ss:$28 sps:$4 sm:$0xff]   ;;  %v1360_v62 = vld [vmem:[%s1847_s3 + $0x320] ss:$28 sps:$4 sm:$0xff]  }
  0x54   :  { %v1357_v60 = vld [vmem:[%s1847_s3 + $0x358] ss:$28 sps:$4 sm:$0xff]   ;;  %v1363_v0 = vld [vmem:[%s1847_s3 + $0x2e8] ss:$28 sps:$4 sm:$0xff]   ;;  %v1366_v2 = vld [vmem:[%s1847_s3 + $0x2b0] ss:$28 sps:$4 sm:$0xff]  }
  0x55   :  { %v1368_v1 = vld [vmem:[%s1847_s3 + $0x2b4] ss:$28 sps:$4 sm:$0xff]   ;;  %v1371_v3 = vld [vmem:[%s1847_s3 + $0x27c] ss:$28 sps:$4 sm:$0xff]   ;;  %v1374_v5 = vld [vmem:[%s1847_s3 + $0x244] ss:$28 sps:$4 sm:$0xff]  }
  0x56   :  { %v1369_v4 = vld [vmem:[%s1847_s3 + $0x278] ss:$28 sps:$4 sm:$0xff]   ;;  %v1372_v6 = vld [vmem:[%s1847_s3 + $0x240] ss:$28 sps:$4 sm:$0xff]   ;;  %v1377_v7 = vld [vmem:[%s1847_s3 + $0x20c] ss:$28 sps:$4 sm:$0xff]  }
  0x57   :  { %v1375_v8 = vld [vmem:[%s1847_s3 + $0x208] ss:$28 sps:$4 sm:$0xff]   ;;  %v1380_v9 = vld [vmem:[%s1847_s3 + $0x1d4] ss:$28 sps:$4 sm:$0xff]   ;;  %v272_v11 = vsub.s32 2, %v1674_v13  ;;  %v276_v15 = vsub.s32 3, %v1674_v13 }
  0x58   :  { %v1378_v10 = vld [vmem:[%s1847_s3 + $0x1d0] ss:$28 sps:$4 sm:$0xff]   ;;  %v260_v12 = vld [vmem:[%s1848_s4] sm:$0xff]  ;;  %s1418_s3 = smov [#allocation2]  }
  0x59   :  { %s1056_s4 = sshll.u32 %s1418_s3, 4  ;;  %s1057_s4 = int_to_ptr.vmem [resolvable:$true] %s1056_s4 }
  0x5a   :  { %s1395_s19 = scalar_lea.vmem %s1057_s4, 896  ;;  %p1400_p1 = scmp.lt.s32.totalorder %s1057_s4, %s1057_s4 }
  0x5b   :  { %p1396_p0 = scmp.ne.s32.totalorder %s1057_s4, %s1395_s19  ;;  %p1401_p2 = scmp.lt.s32.totalorder %s1395_s19, %s1395_s19 }
  0x5d   :  { %p1402_p3 = por %p1401_p2, %p1400_p1 }
  0x5f   :  { %p1403_p4 = pnand %p1402_p3, %p1396_p0 }
  0xd2   :  { %v121_v19 = vpop.f32.mrf.mxu0 }
  0xd3   :  { %v122_v20 = vadd.f32 %v121_v19, %v36_v17  ;;  %v265_v17 = vrot.slane %v260_v12, %v35_v14  ;;  %v269_v19 = vrot.slane %v260_v12, %v39_v16 }
  0xd4   :  { %v123_v21 = vpop.f32.mrf.mxu0 }
  0xd5   :  { %v124_v22 = vadd.f32 %v123_v21, %v40_v18  ;;  %v128_v23 = vmax.f32 %v122_v20, 0.0  ;;  %v273_v18 = vrot.slane %v260_v12, %v272_v11  ;;  %v277_v20 = vrot.slane %v260_v12, %v276_v15 }
  0xd6   :  { %v125_v24 = vpop.f32.mrf.mxu0 }
  0xd7   :  { %v129_v25 = vmax.f32 %v124_v22, 0.0  ;;  %v1691_v30 = vpack.c.bf16 %v128_v23, %v128_v23 }
  0xd8   :  { %v126_v26 = vpop.f32.mrf.mxu0 }
  0xd9   :  { %v131_v27 = vpack.c.bf16 %v129_v25, %v129_v25 }
  0xdb   :  { %905 = vmatprep.mubr.bf16.mxu1 %v131_v27  ;;  %946 = vmatprep.mubr.bf16.mxu0 %v131_v27 }
  0xdc   :  { %906 = vmatmul.mubr.bf16.vlgmr.msra.gmra.mxu1 %v1691_v30  ;;  %947 = vmatmul.mubr.bf16.vlgmr.msra.gmra.mxu0 %v1691_v30 }
  0xdd   :  { %956 = vmatpush1.bf16.msra.mxu1 %v1317_v28  ;;  %1186 = vmatpush3.bf16.msra.mxu0 %v1321_v29 }
  0xde   :  { %987 = vmatprep.mubr.bf16.mxu1 %v131_v27  ;;  %1028 = vmatprep.mubr.bf16.mxu0 %v131_v27 }
  0xdf   :  { %957 = vmatprep.subr.bf16.mxu1 %v1324_v31  ;;  %1187 = vmatprep.subr.bf16.mxu0 %v1325_v32 }
  0xe1   :  { %958 = vmatpush1.bf16.msra.mxu1 %v1322_v33  ;;  %1188 = vmatpush3.bf16.msra.mxu0 %v1326_v34 }
  0xe2   :  { %959 = vmatprep.subr.bf16.mxu1 %v1329_v35  ;;  %1189 = vmatprep.subr.bf16.mxu0 %v1330_v36  ;;  %v288_v35 = vsub.s32 6, %v1674_v13 }
  0xe5   :  { %960 = vmatpush1.bf16.msra.mxu1 %v1327_v37  ;;  %1190 = vmatpush3.bf16.msra.mxu0 %v1331_v38  ;;  %v289_v37 = vrot.slane %v260_v12, %v288_v35 }
  0xe6   :  { %961 = vmatprep.subr.bf16.mxu1 %v1334_v39  ;;  %1191 = vmatprep.subr.bf16.mxu0 %v1335_v40 }
  0xe9   :  { %962 = vmatpush1.bf16.msra.mxu1 %v1332_v41  ;;  %1192 = vmatpush3.bf16.msra.mxu0 %v1336_v42 }
  0xea   :  { %963 = vmatprep.subr.bf16.mxu1 %v1339_v43  ;;  %1193 = vmatprep.subr.bf16.mxu0 %v1340_v44  ;;  %v280_v44 = vsub.s32 4, %v1674_v13 }
  0xed   :  { %964 = vmatpush1.bf16.msra.mxu1 %v1337_v45  ;;  %1194 = vmatpush3.bf16.msra.mxu0 %v1341_v46  ;;  %v284_v45 = vsub.s32 5, %v1674_v13  ;;  %v281_v46 = vrot.slane %v260_v12, %v280_v44 }
  0xee   :  { %965 = vmatprep.subr.bf16.mxu1 %v1344_v47  ;;  %1195 = vmatprep.subr.bf16.mxu0 %v1345_v48 }
  0xef   :  { %v285_v47 = vrot.slane %v260_v12, %v284_v45 }
  0xf1   :  { %966 = vmatpush1.bf16.msra.mxu1 %v1342_v49  ;;  %1196 = vmatpush3.bf16.msra.mxu0 %v1346_v50 }
  0xf2   :  { %967 = vmatprep.subr.bf16.mxu1 %v1349_v51  ;;  %1197 = vmatprep.subr.bf16.mxu0 %v1350_v52 }
  0xf5   :  { %968 = vmatpush1.bf16.msra.mxu1 %v1347_v53  ;;  %1198 = vmatpush3.bf16.msra.mxu0 %v1351_v54 }
  0xf6   :  { %969 = vmatprep.subr.bf16.mxu1 %v1354_v55  ;;  %1199 = vmatprep.subr.bf16.mxu0 %v1355_v56 }
  0xf9   :  { %970 = vmatpush1.bf16.msra.mxu1 %v1352_v57  ;;  %1200 = vmatpush3.bf16.msra.mxu0 %v1356_v58 }
  0xfa   :  { %971 = vmatprep.subr.bf16.mxu1 %v1359_v59 }
  0xfc   :  { %1029 = vmatmul.mubr.bf16.vlgmr.msra.gmra.mxu0 %v1691_v30 }
  0xfd   :  { %972 = vmatpush2.bf16.msra.mxu1 %v1357_v60 }
  0xfe   :  { %973 = vmatprep.subr.bf16.mxu1 %v1362_v61 }
 0x101   :  { %974 = vmatpush2.bf16.msra.mxu1 %v1360_v62 }
 0x102   :  { %975 = vmatprep.subr.bf16.mxu1 %v1365_v63 }
 0x105   :  { %976 = vmatpush2.bf16.msra.mxu1 %v1363_v0 }
 0x106   :  { %977 = vmatprep.subr.bf16.mxu1 %v1368_v1 }
 0x109   :  { %978 = vmatpush2.bf16.msra.mxu1 %v1366_v2 }
 0x10a   :  { %979 = vmatprep.subr.bf16.mxu1 %v1371_v3 }
 0x10d   :  { %980 = vmatpush2.bf16.msra.mxu1 %v1369_v4 }
 0x10e   :  { %981 = vmatprep.subr.bf16.mxu1 %v1374_v5 }
 0x111   :  { %982 = vmatpush2.bf16.msra.mxu1 %v1372_v6 }
 0x112   :  { %983 = vmatprep.subr.bf16.mxu1 %v1377_v7 }
 0x115   :  { %984 = vmatpush2.bf16.msra.mxu1 %v1375_v8 }
 0x116   :  { %985 = vmatprep.subr.bf16.mxu1 %v1380_v9 }
 0x119   :  { %986 = vmatpush2.bf16.msra.mxu1 %v1378_v10 }
 0x11c   :  { %988 = vmatmul.mubr.bf16.vlgmr.msra.gmra.mxu1 %v1691_v30 }
 0x19c   :  { %v907_v21 = vpop.f32.mrf.mxu1  ;;  %v948_v22 = vpop.f32.mrf.mxu0 }
 0x19d   :  { %v908_v23 = vadd.f32 %v907_v21, %v265_v17  ;;  %v949_v24 = vadd.f32 %v948_v22, %v273_v18 }
 0x19e   :  { %v909_v25 = vpop.f32.mrf.mxu1  ;;  %v950_v26 = vpop.f32.mrf.mxu0 }
 0x19f   :  { %1381 = vtanh.f32 %v908_v23  ;;  %v910_v27 = vadd.f32 %v909_v25, %v269_v19  ;;  %v951_v28 = vadd.f32 %v950_v26, %v277_v20 }
 0x1a0   :  { %1383 = vtanh.f32 %v949_v24  ;;  %v911_v29 = vpop.f32.mrf.mxu1  ;;  %v952_v30 = vpop.f32.mrf.mxu0 }
 0x1a1   :  { %1385 = vtanh.f32 %v910_v27 }
 0x1a2   :  { %1387 = vtanh.f32 %v951_v28  ;;  %v912_v14 = vpop.f32.mrf.mxu1  ;;  %v953_v31 = vpop.f32.mrf.mxu0 }
 0x1ac   :  { %v1382_v32 = vpop.eup %1381 }
 0x1ad   :  { %v1384_v33 = vpop.eup %1383  ;;  %1043 = vst [vmem:[#allocation2] sm:$0xff] %v1382_v32 }
 0x1ae   :  { %v1386_v16 = vpop.eup %1385  ;;  %1045 = vst [vmem:[#allocation2 + $0x10] sm:$0xff] %v1384_v33 }
 0x1af   :  { %v1388_v34 = vpop.eup %1387  ;;  %1044 = vst [vmem:[#allocation2 + $0x8] sm:$0xff] %v1386_v16 }
 0x1b0   :  { %1046 = vst [vmem:[#allocation2 + $0x18] sm:$0xff] %v1388_v34 }
 0x1bc   :  { %v1201_v36 = vpop.f32.mrf.mxu0 }
 0x1be   :  { %v1202_v38 = vpop.f32.mrf.mxu0 }
 0x1bf   :  { %v1203_v39 = vadd.f32 %v1202_v38, %v1201_v36 }
 0x1c0   :  { %v1204_v40 = vpop.f32.mrf.mxu0 }
 0x1c1   :  { %v1031_v41 = vadd.f32 %v1203_v39, %v289_v37 }
 0x1c2   :  { %v1205_v42 = vpop.f32.mrf.mxu0 }
 0x1c3   :  { %1389 = vtanh.f32 %v1031_v41 }
 0x1d0   :  { %v1390_v43 = vpop.eup %1389 }
 0x1d1   :  { %1049 = vst [vmem:[#allocation2 + $0x30] sm:$0xff] %v1390_v43 }
 0x1dc   :  { %v989_v48 = vpop.f32.mrf.mxu1 }
 0x1dd   :  { %v990_v49 = vadd.f32 %v989_v48, %v281_v46 }
 0x1de   :  { %v991_v50 = vpop.f32.mrf.mxu1 }
 0x1df   :  { %1391 = vtanh.f32 %v990_v49  ;;  %v992_v51 = vadd.f32 %v991_v50, %v285_v47 }
 0x1e0   :  { %v993_v52 = vpop.f32.mrf.mxu1 }
 0x1e1   :  { %1393 = vtanh.f32 %v992_v51 }
 0x1e2   :  { %v994_v53 = vpop.f32.mrf.mxu1 }
 0x1ec   :  { %v1392_v54 = vpop.eup %1391 }
 0x1ed   :  { %1047 = vst [vmem:[#allocation2 + $0x20] sm:$0xff] %v1392_v54 }
 0x1ee   :  { %v1394_v55 = vpop.eup %1393 }
 0x1ef   :  { %1048 = vst [vmem:[#allocation2 + $0x28] sm:$0xff] %v1394_v55 }
 0x1f0   :  { %1406 = shalt.err (!%p1403_p4)
}
 0x1f1   :  { %1059 = dma.vmem_to_hbm [thread:$0]  %s1057_s4, 896, %s1849_s5, [#allocation3]  }
 0x1f2   :  { %1415 = dma.done.wait [#allocation3], 896  }
 0x1f3   :  { %1416 = vsyncadd [#allocation3], 4294966400 }
 0x1f4   :  { %1063 = vsyncpa [#allocation3], 1 }

</bundles_post_ra>
